<compile_context>
chip_gen: v7x
topology: tpu7x:2x2x1
jax: 0.10.0
libtpu: 0.0.40
codegen_flags: <defaults>
</compile_context>

<pallas_src>
import jax
import jax.numpy as jnp
from jax.experimental import pallas as pl
from jax.experimental.pallas import tpu as pltpu


# ----------------------------- Pallas kernel --------------------------------

def qensemble_kernel(x_ref, w1_ref, b1_ref, w2_ref, b2_ref, wo_ref, bo_ref, o_ref):
    # x_ref: (tb, E*in); weights are block-diagonal packings (lane-dense).
    x = x_ref[...]

    h = jnp.dot(x, w1_ref[...], preferred_element_type=jnp.float32) + b1_ref[...]
    h = jnp.maximum(h, 0.0)

    h = jnp.dot(h, w2_ref[...], preferred_element_type=jnp.float32) + b2_ref[...]
    h = jnp.maximum(h, 0.0)

    q = jnp.dot(h, wo_ref[...], preferred_element_type=jnp.float32) + bo_ref[...]
    o_ref[...] = q.astype(o_ref.dtype)                       # (tb, E)


# ------------------------------- wrapper -------------------------------------

def _block_diag(w):
    """(E, din, dout) -> (E*din, E*dout) block-diagonal matrix."""
    E, din, dout = w.shape
    eye = jnp.eye(E, dtype=w.dtype)
    return jnp.einsum('eio,ef->eifo', w, eye).reshape(E * din, E * dout)


def qensemble_forward(obs, act, w1, b1, w2, b2, wo, bo, *, block_b=256):
    """obs: (E, B, obs_dim), act: (E, B, act_dim) -> (E, B, 1) (f32).

    block_b: batch tile (weights stay resident across tiles).  256 suits
    v6e/v7x; prefer 128 on v5e.
    """
    E, B, _ = obs.shape
    in_size = obs.shape[-1] + act.shape[-1]
    hid = w1.shape[-1]

    # --- wrapper-side packing (weight packing would be hoisted out of the
    #     training step in production; it is parameter-only) -----------------
    x = jnp.concatenate([obs, act], axis=-1)                         # (E, B, in)
    x_pk = jnp.transpose(x, (1, 0, 2)).reshape(B, E * in_size)       # (B, E*in)

    w1_bd = _block_diag(w1)                                          # (E*in,  E*hid)
    w2_bd = _block_diag(w2)                                          # (E*hid, E*hid)
    wo_bd = _block_diag(wo)                                          # (E*hid, E)
    b1_pk = b1.reshape(1, E * hid)
    b2_pk = b2.reshape(1, E * hid)
    bo_pk = bo.reshape(1, E)

    # --- batch tiling (single step at demo shapes) ---------------------------
    tb = min(block_b, max(8, ((B + 7) // 8) * 8))
    Bp = ((B + tb - 1) // tb) * tb
    if Bp != B:
        x_pk = jnp.pad(x_pk, ((0, Bp - B), (0, 0)))

    grid = (Bp // tb,)

    def resident(shape):
        # Same block for every batch tile -> DMA'd once, reused.
        return pl.BlockSpec(shape, lambda i: (0, 0))

    q_pk = pl.pallas_call(
        qensemble_kernel,
        out_shape=jax.ShapeDtypeStruct((Bp, E), jnp.float32),
        grid=grid,
        in_specs=[
            pl.BlockSpec((tb, E * in_size), lambda i: (i, 0)),       # x
            resident((E * in_size, E * hid)),                        # W1 (block-diag)
            resident((1, E * hid)),                                  # b1
            resident((E * hid, E * hid)),                            # W2 (block-diag)
            resident((1, E * hid)),                                  # b2
            resident((E * hid, E)),                                  # Wo (block-diag)
            resident((1, E)),                                        # bo
        ],
        out_specs=pl.BlockSpec((tb, E), lambda i: (i, 0)),
        compiler_params=pltpu.CompilerParams(
            dimension_semantics=("parallel",)),
    )(x_pk, w1_bd, b1_pk, w2_bd, b2_pk, wo_bd, bo_pk)

    # (Bp, E) lane-dense slab -> module contract (E, B, 1).
    return jnp.transpose(q_pk[:B], (1, 0))[..., None]


def qensemble_mean_forward(obs, act, w1, b1, w2, b2, wo, bo, *, num_members):
    """Same (obs, act) batch through all members, mean over the ensemble axis."""
    obs_e = jnp.broadcast_to(obs[None], (num_members,) + obs.shape)
    act_e = jnp.broadcast_to(act[None], (num_members,) + act.shape)
    q = qensemble_forward(obs_e, act_e, w1, b1, w2, b2, wo, bo)
    return jnp.mean(q, axis=0)


# --------------------------- parameter creation ------------------------------

def orthogonal(key, rows, cols, gain=1.0):
    """Orthogonal init matching torch.nn.init.orthogonal_ semantics."""
    flat = jax.random.normal(key, (max(rows, cols), min(rows, cols)), jnp.float32)
    q, r = jnp.linalg.qr(flat)
    sign = jnp.sign(jnp.diag(r))
    sign = jnp.where(sign == 0, 1.0, sign)          # guard against zero diagonal
    q = q * sign
    if rows < cols:
        q = q.T
    return gain * q[:rows, :cols]


def make_ensemble_linear(key, num_members, in_size, out_size):
    keys = jax.random.split(key, num_members)
    w = jnp.stack([orthogonal(k, in_size, out_size) for k in keys])   # (E, in, out)
    b = jnp.zeros((num_members, 1, out_size), jnp.float32)            # (E, 1, out)
    return w, b


# --------------------------------- main --------------------------------------

if __name__ == "__main__":
    ensemble_size = 4
    obs_dim, action_dim = 11, 5
    in_size = obs_dim + action_dim          # 16  -> E*in  = 64
    hid_size = 32                           #      -> E*hid = 128 (full lane width)
    batch = 8

    key = jax.random.PRNGKey(0)
    k_obs, k_act, k_w1, k_w2, k_wo = jax.random.split(key, 5)

    obs = jax.random.normal(k_obs, (ensemble_size, batch, obs_dim), jnp.float32)
    act = jax.random.normal(k_act, (ensemble_size, batch, action_dim), jnp.float32)

    w1, b1 = make_ensemble_linear(k_w1, ensemble_size, in_size, hid_size)
    w2, b2 = make_ensemble_linear(k_w2, ensemble_size, hid_size, hid_size)
    wo, bo = make_ensemble_linear(k_wo, ensemble_size, hid_size, 1)

    q = qensemble_forward(obs, act, w1, b1, w2, b2, wo, bo)
    q = jax.block_until_ready(q)

    # pure-JAX reference (per-member formulation).
    x = jnp.concatenate([obs, act], axis=-1)
    h_ref = jnp.maximum(jnp.einsum('ebi,eio->ebo', x, w1) + b1, 0.0)
    h_ref = jnp.maximum(jnp.einsum('ebi,eio->ebo', h_ref, w2) + b2, 0.0)
    q_ref = jnp.einsum('ebi,eio->ebo', h_ref, wo) + bo

    assert q.shape == (ensemble_size, batch, 1)
    assert jnp.allclose(q, q_ref, atol=1e-5, rtol=1e-5)

    # mean_forward: broadcast same batch to all members + mean over members.
    q_mean = jax.block_until_ready(
        qensemble_mean_forward(obs[0], act[0], w1, b1, w2, b2, wo, bo,
                               num_members=ensemble_size))
    assert q_mean.shape == (batch, 1)
    assert jnp.allclose(q_mean, jnp.mean(
        jnp.einsum('ebi,eio->ebo',
                   jnp.maximum(jnp.einsum('ebi,eio->ebo',
                               jnp.maximum(jnp.einsum('ebi,eio->ebo',
                                           jnp.broadcast_to(
                                               jnp.concatenate([obs[0], act[0]], -1)[None],
                                               (ensemble_size, batch, in_size)),
                                           w1) + b1, 0.0),
                               w2) + b2, 0.0),
                   wo) + bo, axis=0), atol=1e-5, rtol=1e-5)

    print("KERNEL_OK")
</pallas_src>

<mosaic_0001>
module attributes {stable_mosaic.version = 11 : i64} {
  func.func @qensemble_kernel(%arg0: i32, %arg1: memref<8x64xf32, #tpu.memory_space<vmem>>, %arg2: memref<64x128xf32, #tpu.memory_space<vmem>>, %arg3: memref<1x128xf32, #tpu.memory_space<vmem>>, %arg4: memref<128x128xf32, #tpu.memory_space<vmem>>, %arg5: memref<1x128xf32, #tpu.memory_space<vmem>>, %arg6: memref<128x4xf32, #tpu.memory_space<vmem>>, %arg7: memref<1x4xf32, #tpu.memory_space<vmem>>, %arg8: memref<8x4xf32, #tpu.memory_space<vmem>>) attributes {dimension_semantics = [#tpu.dimension_semantics<parallel>], iteration_bounds = array<i64: 1>, scalar_prefetch = 0 : i64, scratch_operands = 0 : i64, tpu.core_type = #tpu.core_type<tc>, window_params = [{transform_indices = @transform_0, window_bounds = array<i64: 8, 64>}, {pipeline_mode = #tpu.pipeline_mode<synchronous>, transform_indices = @transform_1, window_bounds = array<i64: 64, 128>}, {pipeline_mode = #tpu.pipeline_mode<synchronous>, transform_indices = @transform_2, window_bounds = array<i64: 1, 128>}, {pipeline_mode = #tpu.pipeline_mode<synchronous>, transform_indices = @transform_3, window_bounds = array<i64: 128, 128>}, {pipeline_mode = #tpu.pipeline_mode<synchronous>, transform_indices = @transform_4, window_bounds = array<i64: 1, 128>}, {pipeline_mode = #tpu.pipeline_mode<synchronous>, transform_indices = @transform_5, window_bounds = array<i64: 128, 4>}, {pipeline_mode = #tpu.pipeline_mode<synchronous>, transform_indices = @transform_6, window_bounds = array<i64: 1, 4>}, {transform_indices = @transform_7, window_bounds = array<i64: 8, 4>}]} {
    %c0 = arith.constant 0 : index
    %c0_0 = arith.constant 0 : index
    %0 = vector.load %arg1[%c0, %c0_0] : memref<8x64xf32, #tpu.memory_space<vmem>>, vector<8x64xf32>
    %c0_1 = arith.constant 0 : index
    %c0_2 = arith.constant 0 : index
    %1 = vector.load %arg2[%c0_1, %c0_2] : memref<64x128xf32, #tpu.memory_space<vmem>>, vector<64x128xf32>
    %cst = arith.constant dense<0.000000e+00> : vector<8x128xf32>
    %2 = tpu.matmul %0, %1, %cst {dimension_numbers = #tpu.dot_dimension_numbers<[1], [0], [0], [1], [0, 0, 1, 1], [], []>} : vector<8x64xf32>, vector<64x128xf32>, vector<8x128xf32> -> vector<8x128xf32>
    %c0_3 = arith.constant 0 : index
    %c0_4 = arith.constant 0 : index
    %3 = vector.load %arg3[%c0_3, %c0_4] : memref<1x128xf32, #tpu.memory_space<vmem>>, vector<1x128xf32>
    %4 = vector.broadcast %3 : vector<1x128xf32> to vector<8x128xf32>
    %5 = arith.addf %2, %4 : vector<8x128xf32>
    %cst_5 = arith.constant 0.000000e+00 : f32
    %6 = vector.broadcast %cst_5 : f32 to vector<8x128xf32>
    %7 = arith.maximumf %5, %6 : vector<8x128xf32>
    %c0_6 = arith.constant 0 : index
    %c0_7 = arith.constant 0 : index
    %8 = vector.load %arg4[%c0_6, %c0_7] : memref<128x128xf32, #tpu.memory_space<vmem>>, vector<128x128xf32>
    %cst_8 = arith.constant dense<0.000000e+00> : vector<8x128xf32>
    %9 = tpu.matmul %7, %8, %cst_8 {dimension_numbers = #tpu.dot_dimension_numbers<[1], [0], [0], [1], [0, 0, 1, 1], [], []>} : vector<8x128xf32>, vector<128x128xf32>, vector<8x128xf32> -> vector<8x128xf32>
    %c0_9 = arith.constant 0 : index
    %c0_10 = arith.constant 0 : index
    %10 = vector.load %arg5[%c0_9, %c0_10] : memref<1x128xf32, #tpu.memory_space<vmem>>, vector<1x128xf32>
    %11 = vector.broadcast %10 : vector<1x128xf32> to vector<8x128xf32>
    %12 = arith.addf %9, %11 : vector<8x128xf32>
    %cst_11 = arith.constant 0.000000e+00 : f32
    %13 = vector.broadcast %cst_11 : f32 to vector<8x128xf32>
    %14 = arith.maximumf %12, %13 : vector<8x128xf32>
    %c0_12 = arith.constant 0 : index
    %c0_13 = arith.constant 0 : index
    %15 = vector.load %arg6[%c0_12, %c0_13] : memref<128x4xf32, #tpu.memory_space<vmem>>, vector<128x4xf32>
    %cst_14 = arith.constant dense<0.000000e+00> : vector<8x4xf32>
    %16 = tpu.matmul %14, %15, %cst_14 {dimension_numbers = #tpu.dot_dimension_numbers<[1], [0], [0], [1], [0, 0, 1, 1], [], []>} : vector<8x128xf32>, vector<128x4xf32>, vector<8x4xf32> -> vector<8x4xf32>
    %c0_15 = arith.constant 0 : index
    %c0_16 = arith.constant 0 : index
    %17 = vector.load %arg7[%c0_15, %c0_16] : memref<1x4xf32, #tpu.memory_space<vmem>>, vector<1x4xf32>
    %18 = vector.broadcast %17 : vector<1x4xf32> to vector<8x4xf32>
    %19 = arith.addf %16, %18 : vector<8x4xf32>
    %c0_17 = arith.constant 0 : index
    %c0_18 = arith.constant 0 : index
    %20 = vector.load %arg8[%c0_17, %c0_18] : memref<8x4xf32, #tpu.memory_space<vmem>>, vector<8x4xf32>
    tpu.vector_store %arg8[%c0_17, %c0_18], %19 {strides = array<i32>} : memref<8x4xf32, #tpu.memory_space<vmem>>, vector<8x4xf32>,
    return
  }
  func.func @transform_0(%arg0: i32) -> (i32, i32) {
    %c0_i32 = arith.constant 0 : i32
    %c0_i32_0 = arith.constant 0 : i32
    return %arg0, %c0_i32 : i32, i32
  }
  func.func @transform_1(%arg0: i32) -> (i32, i32) {
    %c0_i32 = arith.constant 0 : i32
    %c0_i32_0 = arith.constant 0 : i32
    %c0_i32_1 = arith.constant 0 : i32
    return %c0_i32, %c0_i32_0 : i32, i32
  }
  func.func @transform_2(%arg0: i32) -> (i32, i32) {
    %c0_i32 = arith.constant 0 : i32
    %c0_i32_0 = arith.constant 0 : i32
    %c0_i32_1 = arith.constant 0 : i32
    return %c0_i32, %c0_i32_0 : i32, i32
  }
  func.func @transform_3(%arg0: i32) -> (i32, i32) {
    %c0_i32 = arith.constant 0 : i32
    %c0_i32_0 = arith.constant 0 : i32
    %c0_i32_1 = arith.constant 0 : i32
    return %c0_i32, %c0_i32_0 : i32, i32
  }
  func.func @transform_4(%arg0: i32) -> (i32, i32) {
    %c0_i32 = arith.constant 0 : i32
    %c0_i32_0 = arith.constant 0 : i32
    %c0_i32_1 = arith.constant 0 : i32
    return %c0_i32, %c0_i32_0 : i32, i32
  }
  func.func @transform_5(%arg0: i32) -> (i32, i32) {
    %c0_i32 = arith.constant 0 : i32
    %c0_i32_0 = arith.constant 0 : i32
    %c0_i32_1 = arith.constant 0 : i32
    return %c0_i32, %c0_i32_0 : i32, i32
  }
  func.func @transform_6(%arg0: i32) -> (i32, i32) {
    %c0_i32 = arith.constant 0 : i32
    %c0_i32_0 = arith.constant 0 : i32
    %c0_i32_1 = arith.constant 0 : i32
    return %c0_i32, %c0_i32_0 : i32, i32
  }
  func.func @transform_7(%arg0: i32) -> (i32, i32) {
    %c0_i32 = arith.constant 0 : i32
    %c0_i32_0 = arith.constant 0 : i32
    return %arg0, %c0_i32 : i32, i32
  }
}

</mosaic_0001>

<bundles_post_ra>
// kernel: tpu_custom_call.1
= control target key start
LH: loop header
LB: loop body
LE: loop exit
PB: predicated region body
PF: predicated region fallthrough
CT: control target
= control target key end

     0   :  { %12 = vsyncpa [#allocation3], 0  ;;  %s551_s24 = smov [#allocation2]   ;;  %s743_s0 = inlined_call_operand.vmem [shape: f32[8,64], index: 0, kind: input, shape index: {}]   ;;  %s744_s1 = inlined_call_operand.hbm [shape: f32[64,128], index: 1, kind: input, shape index: {}]   ;;  %s745_s2 = inlined_call_operand.vmem [shape: f32[1,128], index: 2, kind: input, shape index: {}]   ;;  %s746_s3 = inlined_call_operand.vmem [shape: f32[128,128], index: 3, kind: input, shape index: {}]   ;;  %s747_s4 = inlined_call_operand.vmem [shape: f32[1,128], index: 4, kind: input, shape index: {}]   ;;  %s748_s5 = inlined_call_operand.vmem [shape: f32[128,4], index: 5, kind: input, shape index: {}]   ;;  %s749_s6 = inlined_call_operand.vmem [shape: f32[1,4], index: 6, kind: input, shape index: {}]   ;;  %s750_s7 = inlined_call_operand.vmem [shape: f32[8,4], index: 7, kind: output, shape index: {}]  }
   0x1   :  { %s20_s25 = sshll.u32 %s551_s24, 4  ;;  %s527_s28 = scalar_lea.hbm %s744_s1, 1024  ;;  %s21_s25 = int_to_ptr.vmem [resolvable:$true] %s20_s25 }
   0x2   :  { %p528_p0 = scmp.ne.s32.totalorder %s744_s1, %s527_s28  ;;  %p531_p1 = scmp.lt.u32.totalorder %s527_s28, %s744_s1 }
   0x4   :  { %p533_p2 = pnand %p531_p1, %p528_p0 }
   0x6   :  { %536 = shalt.err (!%p533_p2)
}
   0x7   :  { %s537_s10 = scalar_lea.vmem %s21_s25, 1024  ;;  %p542_p4 = scmp.lt.s32.totalorder %s21_s25, %s21_s25 }
   0x8   :  { %p538_p3 = scmp.ne.s32.totalorder %s21_s25, %s537_s10  ;;  %p543_p5 = scmp.lt.s32.totalorder %s537_s10, %s537_s10 }
   0xa   :  { %p544_p6 = por %p543_p5, %p542_p4 }
   0xc   :  { %p545_p7 = pnand %p544_p6, %p538_p3 }
   0xe   :  { %548 = shalt.err (!%p545_p7)
}
   0xf   :  { %s552_s11 = smov 128   ;;  %s553_s12 = smov 8  }
  0x10   :  { %26 = dma.hbm_to_vmem [thread:$0]  %s744_s1, 1024, %s21_s25, [#allocation3], %s552_s11, %s552_s11, %s553_s12  }
  0x11   :  { %549 = dma.done.wait [#allocation3], 1024  }
  0x12   :  { %550 = vsyncadd [#allocation3], 4294966272  ;;  %v554_v0 = vmov 0.0|0.0   ;;  %vm555_vm0 = vmmov 0   ;;  %v556_v1 = vmov 0.0   ;;  %v41_v2 = vld [vmem:[#allocation2] sm:$0xff] }
  0x13   :  { %461 = vmatprep.subr.bf16.mxu0 %v554_v0  ;;  %388 = vmatprep.mubr.msk.f32.mxu0 %vm555_vm0, %v556_v1  ;;  %v42_v3 = vld [vmem:[#allocation2 + $0x8] sm:$0xff]  ;;  %v43_v4 = vld [vmem:[#allocation2 + $0x10] sm:$0xff]  ;;  %v44_v6 = vld [vmem:[#allocation2 + $0x18] sm:$0xff]  ;;  %vm56_vm1 = vcmask 523264   ;;  %vm318_vm2 = vcmask 31744  }
  0x14   :  { %473 = vmatprep.subr.bf16.mxu1 %v554_v0  ;;  %423 = vmatprep.mubr.msk.f32.mxu1 %vm555_vm0, %v556_v1  ;;  %v462_v5 = vpack.c.bf16 %v42_v3, %v41_v2  ;;  %v465_v7 = vpack.c.bf16 %v44_v6, %v43_v4  ;;  %v131_v8 = vld [vmem:[%s746_s3] sm:$0xff]  ;;  %v132_v9 = vld [vmem:[%s746_s3 + $0x8] sm:$0xff]  ;;  %v133_v10 = vld [vmem:[%s746_s3 + $0x10] sm:$0xff] }
  0x15   :  { %v45_v11 = vld [vmem:[#allocation2 + $0x20] sm:$0xff]  ;;  %v46_v12 = vld [vmem:[#allocation2 + $0x28] sm:$0xff]  ;;  %v474_v13 = vpack.c.bf16 %v132_v9, %v131_v8  ;;  %v134_v14 = vld [vmem:[%s746_s3 + $0x18] sm:$0xff] }
  0x16   :  { %463 = vmatpush3.bf16.msra.mxu0 %v462_v5  ;;  %v477_v15 = vpack.c.bf16 %v134_v14, %v133_v10  ;;  %v468_v16 = vpack.c.bf16 %v46_v12, %v45_v11  ;;  %v135_v17 = vld [vmem:[%s746_s3 + $0x20] sm:$0xff]  ;;  %v136_v18 = vld [vmem:[%s746_s3 + $0x28] sm:$0xff]  ;;  %v47_v19 = vld [vmem:[#allocation2 + $0x30] sm:$0xff] }
  0x17   :  { %464 = vmatprep.subr.bf16.mxu0 %v554_v0  ;;  %475 = vmatpush3.bf16.msra.mxu1 %v474_v13  ;;  %v48_v20 = vld [vmem:[#allocation2 + $0x38] sm:$0xff]  ;;  %v480_v21 = vpack.c.bf16 %v136_v18, %v135_v17  ;;  %v137_v23 = vld [vmem:[%s746_s3 + $0x30] sm:$0xff]  ;;  %v40_v26 = vld [vmem:[%s743_s0] sm:$0xff] }
  0x18   :  { %476 = vmatprep.subr.bf16.mxu1 %v554_v0  ;;  %v471_v22 = vpack.c.bf16 %v48_v20, %v47_v19  ;;  %v138_v24 = vld [vmem:[%s746_s3 + $0x38] sm:$0xff]  ;;  %v139_v27 = vld [vmem:[%s746_s3 + $0x40] sm:$0xff]  ;;  %v140_v28 = vld [vmem:[%s746_s3 + $0x48] sm:$0xff] }
  0x19   :  { %v483_v25 = vpack.c.bf16 %v138_v24, %v137_v23  ;;  %v486_v29 = vpack.c.bf16 %v140_v28, %v139_v27  ;;  %v141_v30 = vld [vmem:[%s746_s3 + $0x50] sm:$0xff]  ;;  %v142_v31 = vld [vmem:[%s746_s3 + $0x58] sm:$0xff]  ;;  %v143_v33 = vld [vmem:[%s746_s3 + $0x60] sm:$0xff] }
  0x1a   :  { %466 = vmatpush3.bf16.msra.mxu0 %v465_v7  ;;  %v489_v32 = vpack.c.bf16 %v142_v31, %v141_v30  ;;  %v144_v34 = vld [vmem:[%s746_s3 + $0x68] sm:$0xff]  ;;  %v145_v36 = vld [vmem:[%s746_s3 + $0x70] sm:$0xff]  ;;  %v146_v37 = vld [vmem:[%s746_s3 + $0x78] sm:$0xff] }
  0x1b   :  { %467 = vmatprep.subr.bf16.mxu0 %v554_v0  ;;  %478 = vmatpush3.bf16.msra.mxu1 %v477_v15  ;;  %v492_v35 = vpack.c.bf16 %v144_v34, %v143_v33  ;;  %v495_v38 = vpack.c.bf16 %v146_v37, %v145_v36  ;;  %v225_v39 = vld [vmem:[%s748_s5] sm:$0xff]  ;;  %v226_v40 = vld [vmem:[%s748_s5 + $0x8] sm:$0xff]  ;;  %v227_v41 = vld [vmem:[%s748_s5 + $0x10] sm:$0xff] }
  0x1c   :  { %479 = vmatprep.subr.bf16.mxu1 %v554_v0  ;;  %v498_v42 = vpack.c.bf16 %v226_v40, %v225_v39  ;;  %v228_v43 = vld [vmem:[%s748_s5 + $0x18] sm:$0xff]  ;;  %v229_v45 = vld [vmem:[%s748_s5 + $0x20] sm:$0xff]  ;;  %v230_v46 = vld [vmem:[%s748_s5 + $0x28] sm:$0xff] }
  0x1d   :  { %v501_v44 = vpack.c.bf16 %v228_v43, %v227_v41  ;;  %v504_v47 = vpack.c.bf16 %v230_v46, %v229_v45  ;;  %v231_v48 = vld [vmem:[%s748_s5 + $0x30] sm:$0xff]  ;;  %v232_v49 = vld [vmem:[%s748_s5 + $0x38] sm:$0xff]  ;;  %v233_v51 = vld [vmem:[%s748_s5 + $0x40] sm:$0xff] }
  0x1e   :  { %469 = vmatpush3.bf16.msra.mxu0 %v468_v16  ;;  %v507_v50 = vpack.c.bf16 %v232_v49, %v231_v48  ;;  %v234_v52 = vld [vmem:[%s748_s5 + $0x48] sm:$0xff]  ;;  %v235_v54 = vld [vmem:[%s748_s5 + $0x50] sm:$0xff]  ;;  %v236_v55 = vld [vmem:[%s748_s5 + $0x58] sm:$0xff] }
  0x1f   :  { %470 = vmatprep.subr.bf16.mxu0 %v554_v0  ;;  %481 = vmatpush3.bf16.msra.mxu1 %v480_v21  ;;  %v510_v53 = vpack.c.bf16 %v234_v52, %v233_v51  ;;  %v513_v56 = vpack.c.bf16 %v236_v55, %v235_v54  ;;  %v237_v57 = vld [vmem:[%s748_s5 + $0x60] sm:$0xff]  ;;  %v238_v58 = vld [vmem:[%s748_s5 + $0x68] sm:$0xff]  ;;  %v239_v2 = vld [vmem:[%s748_s5 + $0x70] sm:$0xff] }
  0x20   :  { %482 = vmatprep.subr.bf16.mxu1 %v554_v0  ;;  %v516_v59 = vpack.c.bf16 %v238_v58, %v237_v57  ;;  %v325_v60 = vld [vmem:[%s745_s2] ss:$0 sm:$0xff]  ;;  %v240_v3 = vld [vmem:[%s748_s5 + $0x78] sm:$0xff] }
  0x21   :  { %v519_v4 = vpack.c.bf16 %v240_v3, %v239_v2  ;;  %v328_v9 = vld [vmem:[%s749_s6] ss:$0 sm:$0xff] }
  0x22   :  { %472 = vmatpush3.bf16.msra.mxu0 %v471_v22 }
  0x23   :  { %497 = vmatprep.subr.bf16.mxu0 %v554_v0  ;;  %484 = vmatpush3.bf16.msra.mxu1 %v483_v25 }
  0x24   :  { %485 = vmatprep.subr.bf16.mxu1 %v554_v0 }
  0x25   :  { %389 = vmatmul.mubr.msk.f32.vlgmr.msra.gmra.mrb[0].mxu0 %vm56_vm1, %v40_v26 }
  0x26   :  { %458 = vmatprep.mubr.msk.f32.mxu0 %vm555_vm0, %v556_v1  ;;  %499 = vmatpush3.bf16.msra.mxu0 %v498_v42 }
  0x27   :  { %487 = vmatpush3.bf16.msra.mxu1 %v486_v29  ;;  %500 = vmatprep.subr.bf16.mxu0 %v554_v0 }
  0x28   :  { %488 = vmatprep.subr.bf16.mxu1 %v554_v0 }
  0x2a   :  { %502 = vmatpush3.bf16.msra.mxu0 %v501_v44 }
  0x2b   :  { %490 = vmatpush3.bf16.msra.mxu1 %v489_v32  ;;  %503 = vmatprep.subr.bf16.mxu0 %v554_v0 }
  0x2c   :  { %491 = vmatprep.subr.bf16.mxu1 %v554_v0 }
  0x2e   :  { %505 = vmatpush3.bf16.msra.mxu0 %v504_v47 }
  0x2f   :  { %493 = vmatpush3.bf16.msra.mxu1 %v492_v35  ;;  %506 = vmatprep.subr.bf16.mxu0 %v554_v0 }
  0x30   :  { %494 = vmatprep.subr.bf16.mxu1 %v554_v0 }
  0x32   :  { %508 = vmatpush3.bf16.msra.mxu0 %v507_v50 }
  0x33   :  { %496 = vmatpush3.bf16.msra.mxu1 %v495_v38  ;;  %509 = vmatprep.subr.bf16.mxu0 %v554_v0 }
  0x36   :  { %511 = vmatpush3.bf16.msra.mxu0 %v510_v53 }
  0x37   :  { %512 = vmatprep.subr.bf16.mxu0 %v554_v0 }
  0x3a   :  { %514 = vmatpush3.bf16.msra.mxu0 %v513_v56 }
  0x3b   :  { %515 = vmatprep.subr.bf16.mxu0 %v554_v0 }
  0x3e   :  { %517 = vmatpush3.bf16.msra.mxu0 %v516_v59 }
  0x3f   :  { %518 = vmatprep.subr.bf16.mxu0 %v554_v0  ;;  %v327_v0 = vld [vmem:[%s747_s4] ss:$0 sm:$0xff] }
  0x42   :  { %520 = vmatpush3.bf16.msra.mxu0 %v519_v4 }
  0xf8   :  { %v126_v61 = vpop.f32.mrb[0].mxu0 }
  0xf9   :  { %v127_v62 = vadd.f32 %v325_v60, %v126_v61  ;;  %v390_v63 = vpop.f32.mrb[1].mxu0 }
  0xfb   :  { %v130_v1 = vmax.f32 %v127_v62, 0.0 }
  0xfd   :  { %424 = vmatmul.mubr.f32.vlgmr.msra.gmra.mrb[0].mxu1 %v130_v1 }
 0x1d0   :  { %v220_v5 = vpop.f32.mrb[0].mxu1 }
 0x1d1   :  { %v221_v6 = vadd.f32 %v327_v0, %v220_v5  ;;  %v425_v7 = vpop.f32.mrb[1].mxu1 }
 0x1d3   :  { %v224_v8 = vmax.f32 %v221_v6, 0.0 }
 0x1d5   :  { %459 = vmatmul.mubr.f32.vlgmr.msra.gmra.mrb[2].mxu0 %v224_v8 }
 0x2a8   :  { %v314_v10 = vpop.f32.mrb[2].mxu0 }
 0x2a9   :  { %v315_v11 = vadd.f32 %v328_v9, %v314_v10  ;;  %v460_v12 = vpop.f32.mrb[3].mxu0 }
 0x2ab   :  { %319 = vst.msk [vmem:[%s750_s7] sm:$0xff] %vm318_vm2, %v315_v11 }
 0x2ac   :  { %324 = vsyncpa [#allocation3], 1 }

</bundles_post_ra>
